<compile_context>
chip_gen: v5e
topology: v5e:2x2
jax: 0.10.0
libtpu: 0.0.40
codegen_flags: <defaults>
</compile_context>

<pallas_src>
import functools

import jax
import jax.numpy as jnp
from jax.experimental import pallas as pl
from jax.experimental.pallas import tpu as pltpu

LANE = 128


def _round_up(n, m):
    return ((n + m - 1) // m) * m


def dueling_dqn_kernel(x_ref, w1_ref, b1_ref, w2_ref, b2_ref, wh_ref, bh_ref,
                       q_ref, *, ac_dim):
    # Layer 1: Linear + ReLU (bf16 operands, f32 accumulation).
    x = x_ref[...].astype(jnp.bfloat16)
    h = jnp.dot(x, w1_ref[...], preferred_element_type=jnp.float32) + b1_ref[...]
    h = jnp.maximum(h, 0.0).astype(jnp.bfloat16)
    # Layer 2: Linear + ReLU.
    h = jnp.dot(h, w2_ref[...], preferred_element_type=jnp.float32) + b2_ref[...]
    h = jnp.maximum(h, 0.0).astype(jnp.bfloat16)
    # Fused heads: columns [0:ac_dim] = A, column [ac_dim] = V, rest exact zero pad.
    head = jnp.dot(h, wh_ref[...], preferred_element_type=jnp.float32) + bh_ref[...]
    v = head[:, ac_dim:ac_dim + 1]
    # Zero-padded columns contribute nothing to the sum; remove the V column.
    a_sum = jnp.sum(head, axis=-1, keepdims=True) - v
    a_mean = a_sum * (1.0 / ac_dim)            # compile-time reciprocal, no divide
    # Q = V + (A - mean(A)); valid in the first ac_dim lanes, rest sliced off outside.
    q_ref[...] = (head + (v - a_mean)).astype(q_ref.dtype)


def dueling_dqn_forward(x, packed, ac_dim, *, block_b=2048):
    """x: [B, ob_dim] float32; packed: dict from pack_params()."""
    B, ob_dim = x.shape
    w1, b1 = packed["w1"], packed["b1"]
    w2, b2 = packed["w2"], packed["b2"]
    wh, bh = packed["wh"], packed["bh"]
    hp = w1.shape[1]          # padded hidden width (multiple of 128)
    head_p = wh.shape[1]      # padded head width (multiple of 128)

    # Batch tiling: big lane-dense tiles when B is large, one block otherwise.
    # (On v7x pick block_b ~half of v5e/v6e to respect its 64 MiB VMEM.)
    tb = block_b if B >= block_b else B
    bp = pl.cdiv(B, tb) * tb
    if bp != B:
        x = jnp.pad(x, ((0, bp - B), (0, 0)))

    const = lambda i: (0, 0)  # weights/biases stay resident across grid steps

    q_padded = pl.pallas_call(
        functools.partial(dueling_dqn_kernel, ac_dim=ac_dim),
        out_shape=jax.ShapeDtypeStruct((bp, head_p), jnp.float32),
        grid_spec=pltpu.PrefetchScalarGridSpec(
            num_scalar_prefetch=0,
            grid=(bp // tb,),
            in_specs=[
                pl.BlockSpec((tb, ob_dim), lambda i: (i, 0)),  # x (pipelined)
                pl.BlockSpec((ob_dim, hp), const),             # w1 (bf16)
                pl.BlockSpec((1, hp), const),                  # b1 (f32)
                pl.BlockSpec((hp, hp), const),                 # w2 (bf16)
                pl.BlockSpec((1, hp), const),                  # b2 (f32)
                pl.BlockSpec((hp, head_p), const),             # fused head W (bf16)
                pl.BlockSpec((1, head_p), const),              # fused head b (f32)
            ],
            out_specs=pl.BlockSpec((tb, head_p), lambda i: (i, 0)),
        ),
        compiler_params=pltpu.CompilerParams(
            dimension_semantics=("parallel",),
        ),
    )(x, w1, b1, w2, b2, wh, bh)
    return q_padded[:B, :ac_dim]


def init_params(key, ob_dim, ac_dim, hidden_size=64):
    """PyTorch-like nn.Linear default init (uniform +-1/sqrt(fan_in)), f32, unpadded."""
    def linear(k, fan_in, fan_out):
        kw, kb = jax.random.split(k)
        bound = 1.0 / jnp.sqrt(float(fan_in))
        w = jax.random.uniform(kw, (fan_in, fan_out), jnp.float32, -bound, bound)
        b = jax.random.uniform(kb, (1, fan_out), jnp.float32, -bound, bound)
        return w, b

    k1, k2, k3, k4 = jax.random.split(key, 4)
    w1, b1 = linear(k1, ob_dim, hidden_size)
    w2, b2 = linear(k2, hidden_size, hidden_size)
    wv, bv = linear(k3, hidden_size, 1)
    wa, ba = linear(k4, hidden_size, ac_dim)
    return dict(w1=w1, b1=b1, w2=w2, b2=b2, wv=wv, bv=bv, wa=wa, ba=ba)


def pack_params(params, ac_dim, hidden_size):
    """Zero-pad feature dims to 128 lanes, fuse the V/A heads, cast weights to bf16."""
    hp = _round_up(hidden_size, LANE)
    head_p = _round_up(ac_dim + 1, LANE)

    def pad2(a, rows, cols):
        return jnp.pad(a, ((0, rows - a.shape[0]), (0, cols - a.shape[1])))

    w1 = pad2(params["w1"], params["w1"].shape[0], hp).astype(jnp.bfloat16)
    b1 = pad2(params["b1"], 1, hp)
    w2 = pad2(params["w2"], hp, hp).astype(jnp.bfloat16)
    b2 = pad2(params["b2"], 1, hp)
    # Fused head: [A | V] so the real Q columns land at [0:ac_dim].
    wh = pad2(jnp.concatenate([params["wa"], params["wv"]], axis=1), hp, head_p)
    bh = pad2(jnp.concatenate([params["ba"], params["bv"]], axis=1), 1, head_p)
    return dict(w1=w1, b1=b1, w2=w2, b2=b2,
                wh=wh.astype(jnp.bfloat16), bh=bh)


def reference_forward(x, p):
    h = jnp.maximum(x @ p["w1"] + p["b1"], 0.0)
    h = jnp.maximum(h @ p["w2"] + p["b2"], 0.0)
    v = h @ p["wv"] + p["bv"]
    a = h @ p["wa"] + p["ba"]
    return v + (a - jnp.mean(a, axis=-1, keepdims=True))


if __name__ == "__main__":
    ob_dim, ac_dim, hidden = 16, 8, 64
    batch = 4

    key = jax.random.PRNGKey(0)
    k_params, k_x, k_x2 = jax.random.split(key, 3)
    params = init_params(k_params, ob_dim, ac_dim, hidden_size=hidden)
    packed = pack_params(params, ac_dim, hidden)

    # Small batch (single grid block).
    x = jax.random.normal(k_x, (batch, ob_dim), jnp.float32)
    q = jax.block_until_ready(dueling_dqn_forward(x, packed, ac_dim))
    q_ref = reference_forward(x, params)
    assert q.shape == (batch, ac_dim)
    # bf16 matmul operands (f32 accumulation) loosen agreement with the pure-f32 ref.
    assert jnp.allclose(q, q_ref, atol=5e-2, rtol=5e-2), float(jnp.max(jnp.abs(q - q_ref)))

    # Larger ragged batch exercising the multi-step pipelined grid + padding path.
    big_b = 3000
    xb = jax.random.normal(k_x2, (big_b, ob_dim), jnp.float32)
    qb = jax.block_until_ready(dueling_dqn_forward(xb, packed, ac_dim, block_b=1024))
    qb_ref = reference_forward(xb, params)
    assert qb.shape == (big_b, ac_dim)
    assert jnp.allclose(qb, qb_ref, atol=5e-2, rtol=5e-2), float(jnp.max(jnp.abs(qb - qb_ref)))

    print("KERNEL_OK")
</pallas_src>

<mosaic_0001>
module attributes {stable_mosaic.version = 11 : i64} {
  func.func @dueling_dqn_kernel(%arg0: i32, %arg1: memref<4x16xf32, #tpu.memory_space<vmem>>, %arg2: memref<16x128xbf16, #tpu.memory_space<vmem>>, %arg3: memref<1x128xf32, #tpu.memory_space<vmem>>, %arg4: memref<128x128xbf16, #tpu.memory_space<vmem>>, %arg5: memref<1x128xf32, #tpu.memory_space<vmem>>, %arg6: memref<128x128xbf16, #tpu.memory_space<vmem>>, %arg7: memref<1x128xf32, #tpu.memory_space<vmem>>, %arg8: memref<4x128xf32, #tpu.memory_space<vmem>>) attributes {dimension_semantics = [#tpu.dimension_semantics<parallel>], iteration_bounds = array<i64: 1>, scalar_prefetch = 0 : i64, scratch_operands = 0 : i64, tpu.core_type = #tpu.core_type<tc>, window_params = [{transform_indices = @transform_0, window_bounds = array<i64: 4, 16>}, {pipeline_mode = #tpu.pipeline_mode<synchronous>, transform_indices = @transform_1, window_bounds = array<i64: 16, 128>}, {pipeline_mode = #tpu.pipeline_mode<synchronous>, transform_indices = @transform_2, window_bounds = array<i64: 1, 128>}, {pipeline_mode = #tpu.pipeline_mode<synchronous>, transform_indices = @transform_3, window_bounds = array<i64: 128, 128>}, {pipeline_mode = #tpu.pipeline_mode<synchronous>, transform_indices = @transform_4, window_bounds = array<i64: 1, 128>}, {pipeline_mode = #tpu.pipeline_mode<synchronous>, transform_indices = @transform_5, window_bounds = array<i64: 128, 128>}, {pipeline_mode = #tpu.pipeline_mode<synchronous>, transform_indices = @transform_6, window_bounds = array<i64: 1, 128>}, {transform_indices = @transform_7, window_bounds = array<i64: 4, 128>}]} {
    %c0 = arith.constant 0 : index
    %c0_0 = arith.constant 0 : index
    %0 = vector.load %arg1[%c0, %c0_0] : memref<4x16xf32, #tpu.memory_space<vmem>>, vector<4x16xf32>
    %1 = arith.truncf %0 : vector<4x16xf32> to vector<4x16xbf16>
    %c0_1 = arith.constant 0 : index
    %c0_2 = arith.constant 0 : index
    %2 = vector.load %arg2[%c0_1, %c0_2] : memref<16x128xbf16, #tpu.memory_space<vmem>>, vector<16x128xbf16>
    %cst = arith.constant dense<0.000000e+00> : vector<4x128xf32>
    %3 = tpu.matmul %1, %2, %cst {dimension_numbers = #tpu.dot_dimension_numbers<[1], [0], [0], [1], [0, 0, 1, 1], [], []>} : vector<4x16xbf16>, vector<16x128xbf16>, vector<4x128xf32> -> vector<4x128xf32>
    %c0_3 = arith.constant 0 : index
    %c0_4 = arith.constant 0 : index
    %4 = vector.load %arg3[%c0_3, %c0_4] : memref<1x128xf32, #tpu.memory_space<vmem>>, vector<1x128xf32>
    %5 = vector.broadcast %4 : vector<1x128xf32> to vector<4x128xf32>
    %6 = arith.addf %3, %5 : vector<4x128xf32>
    %cst_5 = arith.constant 0.000000e+00 : f32
    %7 = vector.broadcast %cst_5 : f32 to vector<4x128xf32>
    %8 = arith.maximumf %6, %7 : vector<4x128xf32>
    %9 = arith.truncf %8 : vector<4x128xf32> to vector<4x128xbf16>
    %c0_6 = arith.constant 0 : index
    %c0_7 = arith.constant 0 : index
    %10 = vector.load %arg4[%c0_6, %c0_7] : memref<128x128xbf16, #tpu.memory_space<vmem>>, vector<128x128xbf16>
    %cst_8 = arith.constant dense<0.000000e+00> : vector<4x128xf32>
    %11 = tpu.matmul %9, %10, %cst_8 {dimension_numbers = #tpu.dot_dimension_numbers<[1], [0], [0], [1], [0, 0, 1, 1], [], []>} : vector<4x128xbf16>, vector<128x128xbf16>, vector<4x128xf32> -> vector<4x128xf32>
    %c0_9 = arith.constant 0 : index
    %c0_10 = arith.constant 0 : index
    %12 = vector.load %arg5[%c0_9, %c0_10] : memref<1x128xf32, #tpu.memory_space<vmem>>, vector<1x128xf32>
    %13 = vector.broadcast %12 : vector<1x128xf32> to vector<4x128xf32>
    %14 = arith.addf %11, %13 : vector<4x128xf32>
    %cst_11 = arith.constant 0.000000e+00 : f32
    %15 = vector.broadcast %cst_11 : f32 to vector<4x128xf32>
    %16 = arith.maximumf %14, %15 : vector<4x128xf32>
    %17 = arith.truncf %16 : vector<4x128xf32> to vector<4x128xbf16>
    %c0_12 = arith.constant 0 : index
    %c0_13 = arith.constant 0 : index
    %18 = vector.load %arg6[%c0_12, %c0_13] : memref<128x128xbf16, #tpu.memory_space<vmem>>, vector<128x128xbf16>
    %cst_14 = arith.constant dense<0.000000e+00> : vector<4x128xf32>
    %19 = tpu.matmul %17, %18, %cst_14 {dimension_numbers = #tpu.dot_dimension_numbers<[1], [0], [0], [1], [0, 0, 1, 1], [], []>} : vector<4x128xbf16>, vector<128x128xbf16>, vector<4x128xf32> -> vector<4x128xf32>
    %c0_15 = arith.constant 0 : index
    %c0_16 = arith.constant 0 : index
    %20 = vector.load %arg7[%c0_15, %c0_16] : memref<1x128xf32, #tpu.memory_space<vmem>>, vector<1x128xf32>
    %21 = vector.broadcast %20 : vector<1x128xf32> to vector<4x128xf32>
    %22 = arith.addf %19, %21 : vector<4x128xf32>
    %23 = vector.extract_strided_slice %22 {offsets = [0, 8], sizes = [4, 1], strides = [1, 1]} : vector<4x128xf32> to vector<4x1xf32>
    %cst_17 = arith.constant dense<0.000000e+00> : vector<4xf32>
    %24 = vector.multi_reduction <add>, %22, %cst_17 [1] : vector<4x128xf32> to vector<4xf32>
    %25 = vector.shape_cast %24 : vector<4xf32> to vector<4x1xf32>
    %26 = arith.subf %25, %23 : vector<4x1xf32>
    %cst_18 = arith.constant 1.250000e-01 : f32
    %27 = vector.broadcast %cst_18 : f32 to vector<4x1xf32>
    %28 = arith.mulf %26, %27 : vector<4x1xf32>
    %29 = arith.subf %23, %28 : vector<4x1xf32>
    %30 = vector.broadcast %29 : vector<4x1xf32> to vector<4x128xf32>
    %31 = arith.addf %22, %30 : vector<4x128xf32>
    %c0_19 = arith.constant 0 : index
    %c0_20 = arith.constant 0 : index
    %32 = vector.load %arg8[%c0_19, %c0_20] : memref<4x128xf32, #tpu.memory_space<vmem>>, vector<4x128xf32>
    tpu.vector_store %arg8[%c0_19, %c0_20], %31 {strides = array<i32>} : memref<4x128xf32, #tpu.memory_space<vmem>>, vector<4x128xf32>,
    return
  }
  func.func @transform_0(%arg0: i32) -> (i32, i32) {
    %c0_i32 = arith.constant 0 : i32
    %c0_i32_0 = arith.constant 0 : i32
    return %arg0, %c0_i32 : i32, i32
  }
  func.func @transform_1(%arg0: i32) -> (i32, i32) {
    %c0_i32 = arith.constant 0 : i32
    %c0_i32_0 = arith.constant 0 : i32
    %c0_i32_1 = arith.constant 0 : i32
    return %c0_i32, %c0_i32_0 : i32, i32
  }
  func.func @transform_2(%arg0: i32) -> (i32, i32) {
    %c0_i32 = arith.constant 0 : i32
    %c0_i32_0 = arith.constant 0 : i32
    %c0_i32_1 = arith.constant 0 : i32
    return %c0_i32, %c0_i32_0 : i32, i32
  }
  func.func @transform_3(%arg0: i32) -> (i32, i32) {
    %c0_i32 = arith.constant 0 : i32
    %c0_i32_0 = arith.constant 0 : i32
    %c0_i32_1 = arith.constant 0 : i32
    return %c0_i32, %c0_i32_0 : i32, i32
  }
  func.func @transform_4(%arg0: i32) -> (i32, i32) {
    %c0_i32 = arith.constant 0 : i32
    %c0_i32_0 = arith.constant 0 : i32
    %c0_i32_1 = arith.constant 0 : i32
    return %c0_i32, %c0_i32_0 : i32, i32
  }
  func.func @transform_5(%arg0: i32) -> (i32, i32) {
    %c0_i32 = arith.constant 0 : i32
    %c0_i32_0 = arith.constant 0 : i32
    %c0_i32_1 = arith.constant 0 : i32
    return %c0_i32, %c0_i32_0 : i32, i32
  }
  func.func @transform_6(%arg0: i32) -> (i32, i32) {
    %c0_i32 = arith.constant 0 : i32
    %c0_i32_0 = arith.constant 0 : i32
    %c0_i32_1 = arith.constant 0 : i32
    return %c0_i32, %c0_i32_0 : i32, i32
  }
  func.func @transform_7(%arg0: i32) -> (i32, i32) {
    %c0_i32 = arith.constant 0 : i32
    %c0_i32_0 = arith.constant 0 : i32
    return %arg0, %c0_i32 : i32, i32
  }
}

</mosaic_0001>

<bundles_post_ra>
// kernel: tpu_custom_call.1
= control target key start
LH: loop header
LB: loop body
LE: loop exit
PB: predicated region body
PF: predicated region fallthrough
CT: control target
= control target key end

     0   :  { %12 = vsyncpa [#allocation3], 0  ;;  %s617_s0 = inlined_call_operand.hbm [shape: f32[4,16], index: 0, kind: input, shape index: {}]   ;;  %s618_s1 = inlined_call_operand.hbm [shape: bf16[16,128], index: 1, kind: input, shape index: {}]   ;;  %s619_s2 = inlined_call_operand.vmem [shape: f32[1,128], index: 2, kind: input, shape index: {}]   ;;  %s620_s3 = inlined_call_operand.hbm [shape: bf16[128,128], index: 3, kind: input, shape index: {}]   ;;  %s621_s4 = inlined_call_operand.vmem [shape: f32[1,128], index: 4, kind: input, shape index: {}]   ;;  %s622_s5 = inlined_call_operand.hbm [shape: bf16[128,128], index: 5, kind: input, shape index: {}]   ;;  %s623_s6 = inlined_call_operand.vmem [shape: f32[1,128], index: 6, kind: input, shape index: {}]   ;;  %s624_s7 = inlined_call_operand.hbm [shape: f32[4,128], index: 7, kind: output, shape index: {}]  }
   0x1   :  { %13 = vsyncpa [#allocation6], 0 }
   0x2   :  { %14 = vsyncpa [#allocation9], 0  ;;  %s31_s26 = sshll.u32 %s618_s1, 4  ;;  %s32_s26 = int_to_ptr.hbm [resolvable:$true] %s31_s26 }
   0x3   :  { %15 = vsyncpa [#allocation4], 0  ;;  %s545_s27 = smov [#allocation5]   ;;  %s21_s8 = sshll.u32 %s617_s0, 4  ;;  %s22_s8 = int_to_ptr.hbm [resolvable:$true] %s21_s8 }
   0x4   :  { %s33_s28 = sshll.u32 %s545_s27, 4  ;;  %s546_s9 = smov 64   ;;  %s34_s28 = int_to_ptr.vmem [resolvable:$true] %s33_s28 }
   0x5   :  { %s547_s10 = smov 4   ;;  %s548_s11 = smov [#allocation2]  }
   0x6   :  { %39 = dma.hbm_to_vmem [thread:$0]  %s32_s26, 128, %s34_s28, [#allocation6], %s546_s9, %s546_s9, %s547_s10  }
   0x7   :  { %s23_s12 = sshll.u32 %s548_s11, 4  ;;  %s46_s15 = sshll.u32 %s620_s3, 4  ;;  %s24_s12 = int_to_ptr.vmem [resolvable:$true] %s23_s12  ;;  %s47_s15 = int_to_ptr.hbm [resolvable:$true] %s46_s15 }
   0x8   :  { %26 = dma.hbm_to_vmem [thread:$0]  %s22_s8, 64, %s24_s12, [#allocation3]  }
   0x9   :  { %s61_s17 = sshll.u32 %s622_s5, 4  ;;  %s549_s18 = smov [#allocation7]   ;;  %s62_s17 = int_to_ptr.hbm [resolvable:$true] %s61_s17 }
   0xa   :  { %s48_s19 = sshll.u32 %s549_s18, 4  ;;  %s550_s0 = smov [#allocation8]   ;;  %s49_s19 = int_to_ptr.vmem [resolvable:$true] %s48_s19 }
   0xb   :  { %54 = dma.hbm_to_vmem [thread:$0]  %s47_s15, 1024, %s49_s19, [#allocation6], %s546_s9, %s546_s9, %s547_s10  }
   0xc   :  { %s63_s20 = sshll.u32 %s550_s0, 4  ;;  %s64_s20 = int_to_ptr.vmem [resolvable:$true] %s63_s20 }
   0xd   :  { %69 = dma.hbm_to_vmem [thread:$0]  %s62_s17, 1024, %s64_s20, [#allocation9], %s546_s9, %s546_s9, %s547_s10  }
   0xe   :  { %537 = dma.done.wait [#allocation3], 64  }
   0xf   :  { %538 = vsyncadd [#allocation3], 4294967232 }
  0x10   :  { %539 = dma.done.wait [#allocation6], 1152  }
  0x11   :  { %540 = vsyncadd [#allocation6], 4294966144 }
  0x12   :  { %541 = dma.done.wait [#allocation9], 1024  }
  0x13   :  { %542 = vsyncadd [#allocation9], 4294966272  ;;  %v388_v0 = vld [vmem:[#allocation5] sm:$0xff]  ;;  %v89_v1 = vld [vmem:[#allocation2] sm:$0xf]  ;;  %vm103_vm0 = vcmask 130048  }
  0x14   :  { %v396_v2 = vld [vmem:[#allocation7 + $0x38] sm:$0xff]  ;;  %v90_v3 = vpack.c.bf16 %v89_v1, %v89_v1  ;;  %114 = vmatpush.bf16.msra.mxu0 %v388_v0  ;;  %v395_v4 = vld [vmem:[#allocation7 + $0x30] sm:$0xff]  ;;  %v394_v5 = vld [vmem:[#allocation7 + $0x28] sm:$0xff]  ;;  %vm286_vm1 = vcmask 1043456   ;;  %v551_v36 = vmov 8   ;;  %s307_s27 = sshll.u32 %s624_s7, 4  ;;  %s308_s27 = int_to_ptr.hbm [resolvable:$true] %s307_s27 }
  0x15   :  { %190 = vmatpush.bf16.msra.mxu1 %v396_v2  ;;  %v393_v6 = vld [vmem:[#allocation7 + $0x20] sm:$0xff]  ;;  %v392_v7 = vld [vmem:[#allocation7 + $0x18] sm:$0xff]  ;;  %v391_v8 = vld [vmem:[#allocation7 + $0x10] sm:$0xff]  ;;  %413 = vset.pattern.permute.xlu0 %v551_v36 }
  0x16   :  { %v390_v9 = vld [vmem:[#allocation7 + $0x8] sm:$0xff]  ;;  %v389_v10 = vld [vmem:[#allocation7] sm:$0xff]  ;;  %v404_v11 = vld [vmem:[#allocation8 + $0x38] sm:$0xff] }
  0x17   :  { %323 = vmatmul.msk.bf16.vlgmr.msra.gmra.mxu0 %vm103_vm0, %v90_v3  ;;  %273 = vmatpush.bf16.msra.mxu2 %v404_v11  ;;  %v403_v12 = vld [vmem:[#allocation8 + $0x30] sm:$0xff]  ;;  %v402_v13 = vld [vmem:[#allocation8 + $0x28] sm:$0xff]  ;;  %v401_v14 = vld [vmem:[#allocation8 + $0x20] sm:$0xff] }
  0x18   :  { %v400_v15 = vld [vmem:[#allocation8 + $0x18] sm:$0xff]  ;;  %v399_v16 = vld [vmem:[#allocation8 + $0x10] sm:$0xff]  ;;  %v398_v23 = vld [vmem:[#allocation8 + $0x8] sm:$0xff] }
  0x19   :  { %191 = vmatpush.bf16.msra.mxu1 %v395_v4  ;;  %v414_v17 = vld [vmem:[%s619_s2] ss:$0 sm:$0xff]  ;;  %v397_v24 = vld [vmem:[#allocation8] sm:$0xff] }
  0x1a   :  { %v415_v25 = vld [vmem:[%s621_s4] ss:$0 sm:$0xff]  ;;  %s552_s4 = smov [#allocation10]  }
  0x1b   :  { %274 = vmatpush.bf16.msra.mxu2 %v403_v12  ;;  %v416_v31 = vld [vmem:[%s623_s6] ss:$0 sm:$0xff]  ;;  %s305_s24 = sshll.u32 %s552_s4, 4  ;;  %s306_s24 = int_to_ptr.vmem [resolvable:$true] %s305_s24 }
  0x1d   :  { %192 = vmatpush.bf16.msra.mxu1 %v394_v5 }
  0x1f   :  { %275 = vmatpush.bf16.msra.mxu2 %v402_v13 }
  0x21   :  { %193 = vmatpush.bf16.msra.mxu1 %v393_v6 }
  0x23   :  { %276 = vmatpush.bf16.msra.mxu2 %v401_v14 }
  0x25   :  { %194 = vmatpush.bf16.msra.mxu1 %v392_v7 }
  0x27   :  { %277 = vmatpush.bf16.msra.mxu2 %v400_v15 }
  0x29   :  { %195 = vmatpush.bf16.msra.mxu1 %v391_v8 }
  0x2b   :  { %278 = vmatpush.bf16.msra.mxu2 %v399_v16 }
  0x2d   :  { %196 = vmatpush.bf16.msra.mxu1 %v390_v9 }
  0x2f   :  { %279 = vmatpush.bf16.msra.mxu2 %v398_v23 }
  0x31   :  { %197 = vmatpush.bf16.msra.mxu1 %v389_v10 }
  0x33   :  { %280 = vmatpush.bf16.msra.mxu2 %v397_v24 }
  0x94   :  { %v116_v18 = vpop.f32.mrf.mxu0 }
  0x95   :  { %v117_v19 = vadd.f32 %v414_v17, %v116_v18 }
  0x97   :  { %v120_v20 = vmax.f32 %v117_v19, 0.0 }
  0x99   :  { %v121_v21 = vpack.c.bf16 %v120_v20, %v120_v20 }
  0x9b   :  { %198 = vmatmul.bf16.vlgmr.msra.gmra.mxu1 %v121_v21 }
  0x9c   :  { %v118_v22 = vpop.f32.mrf.mxu0 }
 0x118   :  { %v199_v26 = vpop.f32.mrf.mxu1 }
 0x119   :  { %v200_v27 = vadd.f32 %v415_v25, %v199_v26 }
 0x11b   :  { %v203_v28 = vmax.f32 %v200_v27, 0.0 }
 0x11d   :  { %v204_v29 = vpack.c.bf16 %v203_v28, %v203_v28 }
 0x11f   :  { %281 = vmatmul.bf16.vlgmr.msra.gmra.mxu2 %v204_v29 }
 0x120   :  { %v201_v30 = vpop.f32.mrf.mxu1 }
 0x1a2   :  { %v282_v32 = vpop.f32.mrf.mxu2 }
 0x1a3   :  { %v283_v33 = vadd.f32 %v416_v31, %v282_v32 }
 0x1a5   :  { %v287_v34 = vsel %vm286_vm1, %v283_v33, 0.0 }
 0x1a6   :  { %288 = vadd.xlane.f32.xlu0 %v287_v34 }
 0x1aa   :  { %v284_v35 = vpop.f32.mrf.mxu2 }
 0x219   :  { %v289_v37 = vpop.xlane.xlu0 %288 }
 0x21a   :  { %v290_v38 = vsub.f32 %v289_v37, %v283_v33 }
 0x21c   :  { %v291_v39 = vmul.f32 0.125, %v290_v38 }
 0x21e   :  { %v292_v40 = vsub.f32 %v283_v33, %v291_v39 }
 0x220   :  { %295 = vperm.xlu0 %413, %v292_v40  }
 0x292   :  { %v296_v41 = vpop.permute.xlu0 %295 }
 0x293   :  { %v298_v42 = vadd.f32 %v296_v41, %v283_v33 }
 0x295   :  { %299 = vst [vmem:[#allocation10] sm:$0xf] %v298_v42 }
 0x296   :  { %310 = dma.vmem_to_hbm [thread:$0]  %s306_s24, 64, %s308_s27, [#allocation4]  }
 0x297   :  { %543 = dma.done.wait [#allocation4], 64  }
 0x298   :  { %544 = vsyncadd [#allocation4], 4294967232 }
 0x299   :  { %315 = vsyncpa [#allocation3], 1 }
 0x29a   :  { %316 = vsyncpa [#allocation6], 1 }
 0x29b   :  { %317 = vsyncpa [#allocation9], 1 }
 0x29c   :  { %318 = vsyncpa [#allocation4], 1 }

</bundles_post_ra>
